<compile_context>
chip_gen: v5e
topology: v5e:2x2
jax: 0.10.0
libtpu: 0.0.40
codegen_flags: <defaults>
</compile_context>

<pallas_src>
import jax
import jax.numpy as jnp
from jax.experimental import pallas as pl
from jax.experimental.pallas import tpu as pltpu


def gpt_head_kernel(x_ref, gamma_ref, beta_ref, wt_ref, b_ref, o_ref, xn_ref):
    # Grid: (row_tiles, vocab_tiles); rows outer ("parallel"), vocab inner
    # ("arbitrary").
    #   x_ref:     (TM, n_embed)    current row tile (DMA'd once per row tile)
    #   gamma_ref: (1,  n_embed)    LayerNorm weight
    #   beta_ref:  (1,  n_embed)    LayerNorm bias
    #   wt_ref:    (n_embed, TN)    Linear weight tile, pre-transposed (W^T)
    #   b_ref:     (1,  TN)         Linear bias tile
    #   o_ref:     (TM, TN)         logits tile
    #   xn_ref:    (TM, n_embed)    VMEM scratch: LayerNorm'd rows in matmul dtype
    j = pl.program_id(1)

    # LayerNorm once per row tile, reused across all vocab tiles.
    @pl.when(j == 0)
    def _():
        x = x_ref[...].astype(jnp.float32)
        mean = jnp.mean(x, axis=-1, keepdims=True)
        var = jnp.mean(jnp.square(x - mean), axis=-1, keepdims=True)
        xn = (x - mean) * jax.lax.rsqrt(var + 1e-5)  # eps = PyTorch default
        xn = xn * gamma_ref[...].astype(jnp.float32) + beta_ref[...].astype(jnp.float32)
        xn_ref[...] = xn.astype(xn_ref.dtype)

    # Linear head tile: logits = xn @ W^T_tile + b_tile  (MXU, f32 accumulate).
    logits = jnp.dot(xn_ref[...], wt_ref[...], preferred_element_type=jnp.float32)
    logits = logits + b_ref[...].astype(jnp.float32)
    o_ref[...] = logits.astype(o_ref.dtype)


def _round_up(x, m):
    return (x + m - 1) // m * m


def gpt_head(x, gamma, beta, w_t, b, *, tile_rows=256, tile_vocab=512):
    """LayerNorm + Linear head.

    x:      (B, T, n_embed)   activations (f32 or bf16)
    gamma:  (n_embed,)        LayerNorm weight
    beta:   (n_embed,)        LayerNorm bias
    w_t:    (n_embed, vocab)  head weight, pre-transposed ONCE at load time
    b:      (vocab,)          head bias
    returns (B, T, vocab) in x.dtype
    """
    B, T, n_embed = x.shape
    assert w_t.shape[0] == n_embed
    vocab = w_t.shape[1]
    rows = B * T

    # Tile sizes: MXU/lane friendly, clamped to the (padded) problem size.
    tm = min(tile_rows, _round_up(rows, 8))
    tn = min(tile_vocab, _round_up(vocab, 128))
    rows_p = _round_up(rows, tm)
    vocab_p = _round_up(vocab, tn)

    x2 = x.reshape(rows, n_embed)
    if rows_p != rows:
        x2 = jnp.pad(x2, ((0, rows_p - rows), (0, 0)))
    if vocab_p != vocab:
        # In a real model, pad the weight/bias once at load time instead.
        w_t = jnp.pad(w_t, ((0, 0), (0, vocab_p - vocab)))
        b = jnp.pad(b, (0, vocab_p - vocab))

    gamma2 = gamma.reshape(1, n_embed)
    beta2 = beta.reshape(1, n_embed)
    b2 = b.reshape(1, vocab_p)

    mm_dtype = w_t.dtype          # matmul operand dtype (bf16 recommended)
    out_dtype = x.dtype           # emit logits in the activation dtype

    grid = (rows_p // tm, vocab_p // tn)

    # VMEM budget: double-buffered x / W / bias / out tiles + LN scratch,
    # clamped to 64 MiB so the same sizing is legal on v7x.
    itm = lambda dt: jnp.dtype(dt).itemsize
    vmem_bytes = (
        2 * tm * n_embed * itm(x2.dtype)       # x tile
        + 2 * n_embed * tn * itm(mm_dtype)     # W^T tile
        + 2 * tm * tn * itm(out_dtype)         # out tile
        + 2 * tn * itm(b2.dtype)               # bias tile
        + 2 * 2 * n_embed * itm(gamma2.dtype)  # gamma / beta
        + tm * n_embed * itm(mm_dtype)         # LN scratch
    )
    vmem_limit = min(64 << 20, max(32 << 20, int(vmem_bytes) + (8 << 20)))

    out2 = pl.pallas_call(
        gpt_head_kernel,
        out_shape=jax.ShapeDtypeStruct((rows_p, vocab_p), out_dtype),
        grid_spec=pltpu.PrefetchScalarGridSpec(
            num_scalar_prefetch=0,
            grid=grid,
            in_specs=[
                pl.BlockSpec((tm, n_embed), lambda i, j: (i, 0)),
                pl.BlockSpec((1, n_embed), lambda i, j: (0, 0)),
                pl.BlockSpec((1, n_embed), lambda i, j: (0, 0)),
                pl.BlockSpec((n_embed, tn), lambda i, j: (0, j)),
                pl.BlockSpec((1, tn), lambda i, j: (0, j)),
            ],
            out_specs=pl.BlockSpec((tm, tn), lambda i, j: (i, j)),
            scratch_shapes=[pltpu.VMEM((tm, n_embed), mm_dtype)],
        ),
        compiler_params=pltpu.CompilerParams(
            dimension_semantics=("parallel", "arbitrary"),
            vmem_limit_bytes=vmem_limit,
        ),
    )(x2, gamma2, beta2, w_t, b2)

    out2 = out2[:rows, :vocab]
    return out2.reshape(B, T, vocab)


def gpt_head_ref(x, gamma, beta, w, b):
    xf = x.astype(jnp.float32)
    mean = jnp.mean(xf, axis=-1, keepdims=True)
    var = jnp.mean(jnp.square(xf - mean), axis=-1, keepdims=True)
    xn = (xf - mean) * jax.lax.rsqrt(var + 1e-5)
    xn = xn * gamma + beta
    return xn @ w.T + b


if __name__ == "__main__":
    B, T, n_embed, vocab = 2, 8, 32, 64

    key = jax.random.PRNGKey(0)
    kx, kw, kb = jax.random.split(key, 3)

    x = jax.random.normal(kx, (B, T, n_embed), dtype=jnp.float32)

    # nn.LayerNorm defaults: gamma=1, beta=0; nn.Linear: small weight + bias.
    gamma = jnp.ones((n_embed,), dtype=jnp.float32)
    beta = jnp.zeros((n_embed,), dtype=jnp.float32)
    w = jax.random.normal(kw, (vocab, n_embed), dtype=jnp.float32) * 0.02
    b = jax.random.normal(kb, (vocab,), dtype=jnp.float32) * 0.01

    # Transpose ONCE at "weight load" time (kept out of the per-call path).
    w_t = jnp.transpose(w)  # (n_embed, vocab)

    # f32 path: tight check against the reference.
    logits = jax.block_until_ready(gpt_head(x, gamma, beta, w_t, b))
    ref = gpt_head_ref(x, gamma, beta, w, b)
    assert logits.shape == (B, T, vocab)
    assert logits.dtype == x.dtype
    assert jnp.allclose(logits, ref, atol=1e-4, rtol=1e-4)

    # bf16 path (recommended at real sizes): bf16 MXU matmul, f32 accumulation.
    x_bf = x.astype(jnp.bfloat16)
    wt_bf = w_t.astype(jnp.bfloat16)
    logits_bf = jax.block_until_ready(gpt_head(x_bf, gamma, beta, wt_bf, b))
    assert logits_bf.shape == (B, T, vocab)
    assert logits_bf.dtype == jnp.bfloat16
    assert jnp.allclose(logits_bf.astype(jnp.float32), ref, atol=5e-2, rtol=5e-2)

    print("KERNEL_OK")
</pallas_src>

<mosaic_0001>
module attributes {stable_mosaic.version = 11 : i64} {
  func.func @gpt_head_kernel(%arg0: i32, %arg1: i32, %arg2: memref<16x32xf32, #tpu.memory_space<vmem>>, %arg3: memref<1x32xf32, #tpu.memory_space<vmem>>, %arg4: memref<1x32xf32, #tpu.memory_space<vmem>>, %arg5: memref<32x128xf32, #tpu.memory_space<vmem>>, %arg6: memref<1x128xf32, #tpu.memory_space<vmem>>, %arg7: memref<16x128xf32, #tpu.memory_space<vmem>>, %arg8: memref<16x32xf32, #tpu.memory_space<vmem>>) attributes {dimension_semantics = [#tpu.dimension_semantics<parallel>, #tpu.dimension_semantics<arbitrary>], iteration_bounds = array<i64: 1, 1>, scalar_prefetch = 0 : i64, scratch_operands = 1 : i64, tpu.core_type = #tpu.core_type<tc>, window_params = [{transform_indices = @transform_0, window_bounds = array<i64: 16, 32>}, {pipeline_mode = #tpu.pipeline_mode<synchronous>, transform_indices = @transform_1, window_bounds = array<i64: 1, 32>}, {pipeline_mode = #tpu.pipeline_mode<synchronous>, transform_indices = @transform_2, window_bounds = array<i64: 1, 32>}, {transform_indices = @transform_3, window_bounds = array<i64: 32, 128>}, {transform_indices = @transform_4, window_bounds = array<i64: 1, 128>}, {transform_indices = @transform_5, window_bounds = array<i64: 16, 128>}]} {
    %c0_i32 = arith.constant 0 : i32
    %0 = arith.cmpi eq, %arg1, %c0_i32 : i32
    %1 = arith.extui %0 : i1 to i32
    %c0_i32_0 = arith.constant 0 : i32
    %2 = arith.cmpi ne, %1, %c0_i32_0 : i32
    scf.if %2 {
      %c0_8 = arith.constant 0 : index
      %c0_9 = arith.constant 0 : index
      %10 = vector.load %arg2[%c0_8, %c0_9] : memref<16x32xf32, #tpu.memory_space<vmem>>, vector<16x32xf32>
      %cst_10 = arith.constant dense<0.000000e+00> : vector<16xf32>
      %11 = vector.multi_reduction <add>, %10, %cst_10 [1] : vector<16x32xf32> to vector<16xf32>
      %12 = vector.shape_cast %11 : vector<16xf32> to vector<16x1xf32>
      %cst_11 = arith.constant 3.200000e+01 : f32
      %13 = vector.broadcast %cst_11 : f32 to vector<16x1xf32>
      %14 = arith.divf %12, %13 : vector<16x1xf32>
      %15 = vector.broadcast %14 : vector<16x1xf32> to vector<16x32xf32>
      %16 = arith.subf %10, %15 : vector<16x32xf32>
      %17 = arith.mulf %16, %16 : vector<16x32xf32>
      %cst_12 = arith.constant dense<0.000000e+00> : vector<16xf32>
      %18 = vector.multi_reduction <add>, %17, %cst_12 [1] : vector<16x32xf32> to vector<16xf32>
      %19 = vector.shape_cast %18 : vector<16xf32> to vector<16x1xf32>
      %cst_13 = arith.constant 3.200000e+01 : f32
      %20 = vector.broadcast %cst_13 : f32 to vector<16x1xf32>
      %21 = arith.divf %19, %20 : vector<16x1xf32>
      %22 = vector.broadcast %14 : vector<16x1xf32> to vector<16x32xf32>
      %23 = arith.subf %10, %22 : vector<16x32xf32>
      %cst_14 = arith.constant 9.99999974E-6 : f32
      %24 = vector.broadcast %cst_14 : f32 to vector<16x1xf32>
      %25 = arith.addf %21, %24 : vector<16x1xf32>
      %26 = math.rsqrt %25 : vector<16x1xf32>
      %27 = vector.broadcast %26 : vector<16x1xf32> to vector<16x32xf32>
      %28 = arith.mulf %23, %27 : vector<16x32xf32>
      %c0_15 = arith.constant 0 : index
      %c0_16 = arith.constant 0 : index
      %29 = vector.load %arg3[%c0_15, %c0_16] : memref<1x32xf32, #tpu.memory_space<vmem>>, vector<1x32xf32>
      %30 = vector.broadcast %29 : vector<1x32xf32> to vector<16x32xf32>
      %31 = arith.mulf %28, %30 : vector<16x32xf32>
      %c0_17 = arith.constant 0 : index
      %c0_18 = arith.constant 0 : index
      %32 = vector.load %arg4[%c0_17, %c0_18] : memref<1x32xf32, #tpu.memory_space<vmem>>, vector<1x32xf32>
      %33 = vector.broadcast %32 : vector<1x32xf32> to vector<16x32xf32>
      %34 = arith.addf %31, %33 : vector<16x32xf32>
      %c0_19 = arith.constant 0 : index
      %c0_20 = arith.constant 0 : index
      %35 = vector.load %arg8[%c0_19, %c0_20] : memref<16x32xf32, #tpu.memory_space<vmem>>, vector<16x32xf32>
      tpu.vector_store %arg8[%c0_19, %c0_20], %34 {strides = array<i32>} : memref<16x32xf32, #tpu.memory_space<vmem>>, vector<16x32xf32>,
    } else {
    }
    %c0 = arith.constant 0 : index
    %c0_1 = arith.constant 0 : index
    %3 = vector.load %arg8[%c0, %c0_1] : memref<16x32xf32, #tpu.memory_space<vmem>>, vector<16x32xf32>
    %c0_2 = arith.constant 0 : index
    %c0_3 = arith.constant 0 : index
    %4 = vector.load %arg5[%c0_2, %c0_3] : memref<32x128xf32, #tpu.memory_space<vmem>>, vector<32x128xf32>
    %cst = arith.constant dense<0.000000e+00> : vector<16x128xf32>
    %5 = tpu.matmul %3, %4, %cst {dimension_numbers = #tpu.dot_dimension_numbers<[1], [0], [0], [1], [0, 0, 1, 1], [], []>} : vector<16x32xf32>, vector<32x128xf32>, vector<16x128xf32> -> vector<16x128xf32>
    %c0_4 = arith.constant 0 : index
    %c0_5 = arith.constant 0 : index
    %6 = vector.load %arg6[%c0_4, %c0_5] : memref<1x128xf32, #tpu.memory_space<vmem>>, vector<1x128xf32>
    %7 = vector.broadcast %6 : vector<1x128xf32> to vector<16x128xf32>
    %8 = arith.addf %5, %7 : vector<16x128xf32>
    %c0_6 = arith.constant 0 : index
    %c0_7 = arith.constant 0 : index
    %9 = vector.load %arg7[%c0_6, %c0_7] : memref<16x128xf32, #tpu.memory_space<vmem>>, vector<16x128xf32>
    tpu.vector_store %arg7[%c0_6, %c0_7], %8 {strides = array<i32>} : memref<16x128xf32, #tpu.memory_space<vmem>>, vector<16x128xf32>,
    return
  }
  func.func @transform_0(%arg0: i32, %arg1: i32) -> (i32, i32) {
    %c0_i32 = arith.constant 0 : i32
    %c0_i32_0 = arith.constant 0 : i32
    return %arg0, %c0_i32 : i32, i32
  }
  func.func @transform_1(%arg0: i32, %arg1: i32) -> (i32, i32) {
    %c0_i32 = arith.constant 0 : i32
    %c0_i32_0 = arith.constant 0 : i32
    %c0_i32_1 = arith.constant 0 : i32
    return %c0_i32, %c0_i32_0 : i32, i32
  }
  func.func @transform_2(%arg0: i32, %arg1: i32) -> (i32, i32) {
    %c0_i32 = arith.constant 0 : i32
    %c0_i32_0 = arith.constant 0 : i32
    %c0_i32_1 = arith.constant 0 : i32
    return %c0_i32, %c0_i32_0 : i32, i32
  }
  func.func @transform_3(%arg0: i32, %arg1: i32) -> (i32, i32) {
    %c0_i32 = arith.constant 0 : i32
    %c0_i32_0 = arith.constant 0 : i32
    return %c0_i32, %arg1 : i32, i32
  }
  func.func @transform_4(%arg0: i32, %arg1: i32) -> (i32, i32) {
    %c0_i32 = arith.constant 0 : i32
    %c0_i32_0 = arith.constant 0 : i32
    return %c0_i32, %arg1 : i32, i32
  }
  func.func @transform_5(%arg0: i32, %arg1: i32) -> (i32, i32) {
    %c0_i32 = arith.constant 0 : i32
    return %arg0, %arg1 : i32, i32
  }
}

</mosaic_0001>

<bundles_post_ra>
// kernel: tpu_custom_call.1
= control target key start
LH: loop header
LB: loop body
LE: loop exit
PB: predicated region body
PF: predicated region fallthrough
CT: control target
= control target key end

     0   :  { %10 = vsyncpa [#allocation4], 0  ;;  %s396_s0 = inlined_call_operand.hbm [shape: f32[16,32], index: 0, kind: input, shape index: {}]   ;;  %s397_s1 = inlined_call_operand.hbm [shape: f32[1,32], index: 1, kind: input, shape index: {}]   ;;  %s398_s2 = inlined_call_operand.vmem [shape: f32[1,32], index: 2, kind: input, shape index: {}]   ;;  %s399_s3 = inlined_call_operand.hbm [shape: f32[32,128], index: 3, kind: input, shape index: {}]   ;;  %s400_s4 = inlined_call_operand.vmem [shape: f32[1,128], index: 4, kind: input, shape index: {}]   ;;  %s401_s5 = inlined_call_operand.hbm [shape: f32[16,128], index: 5, kind: output, shape index: {}]  }
   0x1   :  { %11 = vsyncpa [#allocation7], 0  ;;  %s31_s20 = sshll.u32 %s397_s1, 4  ;;  %s32_s20 = int_to_ptr.hbm [resolvable:$true] %s31_s20 }
   0x2   :  { %12 = vsyncpa [#allocation5], 0  ;;  %s324_s21 = smov [#allocation6]   ;;  %s17_s25 = sshll.u32 %s396_s0, 4  ;;  %s18_s25 = int_to_ptr.hbm [resolvable:$true] %s17_s25 }
   0x3   :  { %s33_s22 = sshll.u32 %s324_s21, 4  ;;  %s325_s26 = smov [#allocation3]   ;;  %s34_s22 = int_to_ptr.vmem [resolvable:$true] %s33_s22 }
   0x4   :  { %36 = dma.hbm_to_vmem [thread:$0]  %s32_s20, 16, %s34_s22, [#allocation7]  }
   0x5   :  { %s19_s27 = sshll.u32 %s325_s26, 4  ;;  %s326_s28 = smov 128   ;;  %s20_s27 = int_to_ptr.vmem [resolvable:$true] %s19_s27 }
   0x6   :  { %s327_s29 = smov 8   ;;  %s43_s6 = sshll.u32 %s399_s3, 4  ;;  %s44_s6 = int_to_ptr.hbm [resolvable:$true] %s43_s6 }
   0x7   :  { %25 = dma.hbm_to_vmem [thread:$0]  %s18_s25, 256, %s20_s27, [#allocation4], %s326_s28, %s326_s28, %s327_s29  }
   0x8   :  { %s328_s7 = smov [#allocation8]  }
   0x9   :  { %s45_s8 = sshll.u32 %s328_s7, 4  ;;  %s46_s8 = int_to_ptr.vmem [resolvable:$true] %s45_s8 }
   0xa   :  { %51 = dma.hbm_to_vmem [thread:$0]  %s44_s6, 512, %s46_s8, [#allocation7], %s326_s28, %s326_s28, %s327_s29  }
   0xb   :  { %318 = dma.done.wait [#allocation4], 256  }
   0xc   :  { %319 = vsyncadd [#allocation4], 4294967040 }
   0xd   :  { %320 = dma.done.wait [#allocation7], 528  }
   0xe   :  { %321 = vsyncadd [#allocation7], 4294966768  ;;  %vm72_vm0 = vcmask 261120   ;;  %v70_v0 = vld [vmem:[#allocation3] sm:$0xff]  ;;  %v71_v2 = vld [vmem:[#allocation3 + $0x8] sm:$0xff]  ;;  %v329_v4 = vmov 32.0  }
   0xf   :  { %v73_v1 = vsel %vm72_vm0, %v70_v0, 0.0  ;;  %v76_v3 = vsel %vm72_vm0, %v71_v2, 0.0  ;;  %216 = vrcp.f32 %v329_v4  ;;  %v143_v21 = vld [vmem:[#allocation8 + $0x18] sm:$0xff]  ;;  %v142_v22 = vld [vmem:[#allocation8 + $0x10] sm:$0xff]  ;;  %v141_v25 = vld [vmem:[#allocation8 + $0x8] sm:$0xff]  ;;  %s330_s10 = smov [#allocation9]  }
  0x10   :  { %74 = vadd.xlane.f32.xlu0 %v73_v1  ;;  %167 = vmatpush.msra.mxu0 %v143_v21  ;;  %v140_v27 = vld [vmem:[#allocation8] sm:$0xff]  ;;  %v213_v39 = vld [vmem:[#allocation6] ss:$0 sm:$0xff]  ;;  %s184_s11 = sshll.u32 %s330_s10, 4  ;;  %s186_s14 = sshll.u32 %s401_s5, 4  ;;  %s185_s11 = int_to_ptr.vmem [resolvable:$true] %s184_s11  ;;  %s187_s14 = int_to_ptr.hbm [resolvable:$true] %s186_s14 }
  0x11   :  { %202 = vmatpush.msra.mxu1 %v143_v21  ;;  %v214_v42 = vld [vmem:[%s398_s2] ss:$0 sm:$0xff] }
  0x12   :  { %168 = vmatpush.msra.mxu0 %v142_v22  ;;  %v215_v55 = vld [vmem:[%s400_s4] ss:$0 sm:$0xff] }
  0x13   :  { %203 = vmatpush.msra.mxu1 %v142_v22 }
  0x14   :  { %169 = vmatpush.msra.mxu0 %v141_v25 }
  0x15   :  { %v217_v5 = vpop.eup %216  ;;  %204 = vmatpush.msra.mxu1 %v141_v25 }
  0x16   :  { %v80_v6 = vmul.f32 32.0, %v217_v5  ;;  %vm84_vm1 = vweird.f32 %v217_v5  ;;  %170 = vmatpush.msra.mxu0 %v140_v27 }
  0x17   :  { %205 = vmatpush.msra.mxu1 %v140_v27 }
  0x18   :  { %77 = vadd.xlane.f32.xlu0 %v76_v3  ;;  %v81_v7 = vsub.f32 1.0, %v80_v6 }
  0x1a   :  { %v82_v8 = vmul.f32 %v217_v5, %v81_v7 }
  0x1c   :  { %v83_v9 = vadd.f32 %v217_v5, %v82_v8 }
  0x1e   :  { %v85_v10 = vsel %vm84_vm1, %v217_v5, %v83_v9 }
  0x83   :  { %v75_v11 = vpop.xlane.xlu0 %74 }
  0x84   :  { %v86_v12 = vmul.f32 %v85_v10, %v75_v11 }
  0x86   :  { %v88_v13 = vsub.f32 %v70_v0, %v86_v12 }
  0x88   :  { %v90_v14 = vmul.f32 %v88_v13, %v88_v13 }
  0x8a   :  { %v92_v15 = vsel %vm72_vm0, %v90_v14, 0.0 }
  0x8b   :  { %93 = vadd.xlane.f32.xlu1 %v92_v15  ;;  %v78_v16 = vpop.xlane.xlu0 %77 }
  0x8c   :  { %v87_v17 = vmul.f32 %v85_v10, %v78_v16 }
  0x8e   :  { %v89_v18 = vsub.f32 %v71_v2, %v87_v17 }
  0x90   :  { %v91_v19 = vmul.f32 %v89_v18, %v89_v18 }
  0x92   :  { %v95_v20 = vsel %vm72_vm0, %v91_v19, 0.0 }
  0x93   :  { %96 = vadd.xlane.f32.xlu1 %v95_v20 }
  0xfe   :  { %v94_v23 = vpop.xlane.xlu1 %93 }
  0xff   :  { %v98_v24 = vmul.f32 %v94_v23, %v85_v10 }
 0x101   :  { %v100_v26 = vadd.f32 1e-05, %v98_v24 }
 0x103   :  { %218 = vrsqrt.f32 %v100_v26  ;;  %vm108_vm3 = vweird.f32 %v100_v26 }
 0x106   :  { %v97_v28 = vpop.xlane.xlu1 %96 }
 0x107   :  { %v99_v29 = vmul.f32 %v97_v28, %v85_v10 }
 0x109   :  { %v219_v30 = vpop.eup %218  ;;  %v101_v31 = vadd.f32 1e-05, %v99_v29 }
 0x10a   :  { %v103_v32 = vmul.f32 %v219_v30, %v100_v26  ;;  %vm109_vm2 = vweird.f32 %v219_v30 }
 0x10b   :  { %220 = vrsqrt.f32 %v101_v31  ;;  %vm110_vm4 = vmor %vm108_vm3, %vm109_vm2  ;;  %vm118_vm6 = vweird.f32 %v101_v31 }
 0x10c   :  { %v104_v33 = vmul.f32 %v219_v30, %v103_v32 }
 0x10e   :  { %v105_v34 = vmul.f32 0.5, %v104_v33 }
 0x110   :  { %v106_v35 = vsub.f32 1.5, %v105_v34 }
 0x111   :  { %v221_v36 = vpop.eup %220 }
 0x112   :  { %v107_v37 = vmul.f32 %v219_v30, %v106_v35  ;;  %v113_v38 = vmul.f32 %v221_v36, %v101_v31  ;;  %vm119_vm5 = vweird.f32 %v221_v36 }
 0x113   :  { %vm120_vm7 = vmor %vm118_vm6, %vm119_vm5 }
 0x114   :  { %v111_v40 = vsel %vm110_vm4, %v219_v30, %v107_v37  ;;  %v114_v41 = vmul.f32 %v221_v36, %v113_v38 }
 0x115   :  { %v122_v43 = vmul.f32 %v111_v40, %v88_v13 }
 0x116   :  { %v115_v44 = vmul.f32 0.5, %v114_v41 }
 0x117   :  { %v128_v45 = vmul.f32 %v213_v39, %v122_v43 }
 0x118   :  { %v116_v46 = vsub.f32 1.5, %v115_v44 }
 0x119   :  { %v134_v47 = vadd.f32 %v214_v42, %v128_v45 }
 0x11a   :  { %v117_v48 = vmul.f32 %v221_v36, %v116_v46 }
 0x11b   :  { %136 = vst.msk [vmem:[#allocation2] sm:$0xff] %vm72_vm0, %v134_v47 }
 0x11c   :  { %v121_v49 = vsel %vm120_vm7, %v221_v36, %v117_v48 }
 0x11d   :  { %v123_v50 = vmul.f32 %v121_v49, %v89_v18 }
 0x11f   :  { %v129_v51 = vmul.f32 %v213_v39, %v123_v50 }
 0x121   :  { %v135_v52 = vadd.f32 %v214_v42, %v129_v51 }
 0x122   :  { %v138_v53 = vld [vmem:[#allocation2] sm:$0xff] }
 0x123   :  { %137 = vst.msk [vmem:[#allocation2 + $0x8] sm:$0xff] %vm72_vm0, %v135_v52  ;;  %200 = vmatmul.msk.f32.vlgmr.msra.gmra.mxu0 %vm72_vm0, %v138_v53 }
 0x12a   :  { %v139_v54 = vld [vmem:[#allocation2 + $0x8] sm:$0xff] }
 0x12b   :  { %201 = vmatmul.msk.f32.vlgmr.msra.gmra.mxu1 %vm72_vm0, %v139_v54 }
 0x1a0   :  { %v172_v56 = vpop.f32.mrf.mxu0 }
 0x1a1   :  { %v173_v57 = vadd.f32 %v215_v55, %v172_v56 }
 0x1a3   :  { %178 = vst [vmem:[#allocation9] sm:$0xff] %v173_v57 }
 0x1a8   :  { %v175_v58 = vpop.f32.mrf.mxu1 }
 0x1a9   :  { %v176_v59 = vadd.f32 %v215_v55, %v175_v58 }
 0x1ab   :  { %179 = vst [vmem:[#allocation9 + $0x8] sm:$0xff] %v176_v59 }
 0x1ac   :  { %192 = dma.vmem_to_hbm [thread:$0]  %s185_s11, 256, %s187_s14, [#allocation5], %s326_s28, %s326_s28, %s327_s29  }
 0x1ad   :  { %322 = dma.done.wait [#allocation5], 256  }
 0x1ae   :  { %323 = vsyncadd [#allocation5], 4294967040 }
 0x1af   :  { %197 = vsyncpa [#allocation4], 1 }
 0x1b0   :  { %198 = vsyncpa [#allocation7], 1 }
 0x1b1   :  { %199 = vsyncpa [#allocation5], 1 }

</bundles_post_ra>
